<compile_context>
chip_gen: v6e
topology: v6e:2x2x1
jax: 0.10.0
libtpu: 0.0.40
codegen_flags: <defaults>
</compile_context>

<pallas_src>
import functools

import jax
import jax.numpy as jnp
from jax import lax
from jax.experimental import pallas as pl
from jax.experimental.pallas import tpu as pltpu


# ----------------------------------------------------------------------------
# Helpers
# ----------------------------------------------------------------------------
def _round_up(x, m):
    return -(-x // m) * m


def _vmem_capacity_bytes():
    try:
        return int(pltpu.get_tpu_info().vmem_capacity_bytes)
    except Exception:
        return 64 << 20          # conservative (v7x-sized) fallback


def _vmem_estimate(bt, n_pad, E, A, enc_bytes, w_bytes):
    """Rough steady-state VMEM footprint, counting lane padding to 128."""
    e_l = _round_up(E, 128)
    a_l = _round_up(A, 128)
    n_l = _round_up(n_pad, 128)
    bt8 = _round_up(max(bt, 1), 8)
    enc = 2 * bt * n_pad * e_l * enc_bytes        # double-buffered enc tiles
    inter = 3 * bt * n_pad * a_l * 4              # att1 / s f32 intermediates
    # TODO(synk): chunk the (bt, n_pad, A) intermediates along N inside the
    # kernel (fori_loop over N-subtiles) to let bt grow further inside v7x's
    # 64 MiB at production A (~512).
    vec = 4 * bt8 * n_l * 4                       # att / p / alpha rows
    io2 = 2 * bt8 * (a_l + n_l) * 4               # att2 + mask blocks
    outs = 2 * bt8 * (e_l + n_l) * 4              # awe + alpha output blocks
    wts = 2 * (_round_up(E, 8) * a_l * w_bytes + a_l * 4 + 128 * 4)
    return enc + inter + vec + io2 + outs + wts


def _choose_bt(B, n_pad, E, A, enc_bytes, w_bytes, vmem_capacity):
    """Batch elements per grid step (chip-aware)."""
    if B < 16:
        # Tiny batches: one full-batch block (block dims == array dims, so no
        # 8-row alignment needed). Splitting a <16-row batch across v7x's two
        # TensorCores would mostly stream padding bytes on this HBM-heavy
        # kernel, so a single step wins.
        return B

    small_vmem = vmem_capacity <= (64 << 20)      # v7x-class TensorCore
    budget = (24 << 20) if small_vmem else (72 << 20)
    target_rows = 1024 if small_vmem else 4096    # Bt * n_pad rows per GEMM

    bt = _round_up(max(target_rows // max(n_pad, 1), 8), 8)
    # Cap so the grid has >= 2 steps: the "parallel" grid axis is what shards
    # work across v7x's two TensorCores.
    bt = min(bt, _round_up(-(-B // 2), 8))
    bt = min(bt, _round_up(B, 8))

    while bt > 8 and _vmem_estimate(bt, n_pad, E, A, enc_bytes, w_bytes) > budget:
        bt -= 8
    return bt


# ----------------------------------------------------------------------------
# Kernel: one grid step processes Bt batch elements.
# ----------------------------------------------------------------------------
def attention_kernel(enc_ref, att2_ref, mask_ref, we_ref, wf_ref, bf_ref,
                     awe_ref, alpha_ref, *, n_valid):
    bt, n, e = enc_ref.shape
    a = we_ref.shape[1]
    cdt = we_ref.dtype                      # MXU input dtype (f32 or bf16)

    enc = enc_ref[...].astype(cdt)          # (Bt, N, E), streamed in cdt

    # Encoder projection as one big MXU GEMM: (Bt*N, E) @ (E, A) -> (Bt*N, A),
    # f32 accumulate. (Fills the MXU at production E/A; underfilled but still
    # correct at the tiny demo shapes.)
    att1 = jnp.dot(enc.reshape(bt * n, e), we_ref[...],
                   preferred_element_type=jnp.float32).reshape(bt, n, a)

    # Decoder projection (+ both Linear biases) was hoisted to the wrapper.
    s = jnp.tanh(att1 + att2_ref[...][:, None, :])             # (Bt, N, A) f32

    # full_att: VPU multiply + lane reduce instead of an (A, 1) MXU matmul.
    att = jnp.sum(s * wf_ref[...], axis=-1) + bf_ref[...]      # (Bt, N) f32

    # masked_fill(mask == 0, -1e9) for user-masked positions; -inf for the
    # N-padding so a fully user-masked row still softmaxes uniformly over the
    # true N (exactly matching the torch reference).
    att = jnp.where(mask_ref[...] > 0, att, jnp.float32(-1.0e9))
    if n > n_valid:
        lane = lax.broadcasted_iota(jnp.int32, (bt, n), 1)
        att = jnp.where(lane < n_valid, att, -jnp.inf)

    # Softmax over N (the lane axis); reciprocal runs on the EUP slot.
    m = jnp.max(att, axis=-1, keepdims=True)
    p = jnp.exp(att - m)
    denom = jnp.sum(p, axis=-1, keepdims=True)
    alpha = p * pl.reciprocal(denom, approx=True)              # (Bt, N) f32
    alpha_ref[...] = alpha

    # Attention-weighted encoding on the MXU: (Bt,1,N) @ (Bt,N,E) -> (Bt,1,E).
    awe = jnp.einsum('bqn,bne->bqe', alpha[:, None, :].astype(cdt), enc,
                     preferred_element_type=jnp.float32)
    awe_ref[...] = awe[:, 0, :].astype(awe_ref.dtype)


# ----------------------------------------------------------------------------
# Wrapper
# ----------------------------------------------------------------------------
def attention_pallas(encoder_out, decoder_hidden, params, mask=None,
                     *, mxu_dtype=jnp.bfloat16):
    """encoder_out: (B, N, E); decoder_hidden: (B, D); mask: (B, N) or None."""
    B, N, E = encoder_out.shape
    we, be, wd, bd, wf, bf = params           # Linear shapes: W (out,in), b (out,)
    A = we.shape[0]

    # ---- Host-side glue -----------------------------------------------------
    # Hoist the decoder projection; fold both linear biases into it:
    #   att1 + att2 = enc @ We^T + dec @ Wd^T + (be + bd)
    att2 = (decoder_hidden.astype(jnp.float32) @ wd.T.astype(jnp.float32)
            + (bd + be).astype(jnp.float32))                         # (B, A)

    # Stream the encoder (and do the MXU math) in mxu_dtype; f32 accumulate
    # stays inside the kernel. bf16 halves the dominant HBM read.
    enc_s = encoder_out.astype(mxu_dtype)
    we_t = we.T.astype(mxu_dtype)                                    # (E, A)
    wf_row = wf.reshape(1, A).astype(jnp.float32)                    # (1, A)
    bf2 = bf.reshape(1, 1).astype(jnp.float32)                       # (1, 1)

    # Mask kept int32 (see header note): negligible traffic, safe alignment.
    if mask is None:
        mask_i = jnp.ones((B, N), jnp.int32)
    else:
        mask_i = (mask != 0).astype(jnp.int32)   # robust vs. float equality

    # Pad N to a multiple of 8 (clean sublane layout); padded columns are
    # killed with -inf inside the kernel.
    n_pad = _round_up(N, 8)
    if n_pad != N:
        enc_s = jnp.pad(enc_s, ((0, 0), (0, n_pad - N), (0, 0)))
        mask_i = jnp.pad(mask_i, ((0, 0), (0, n_pad - N)))

    enc_bytes = jnp.dtype(mxu_dtype).itemsize
    vmem_cap = _vmem_capacity_bytes()
    bt = _choose_bt(B, n_pad, E, A, enc_bytes, enc_bytes, vmem_cap)

    # Pad B so the grid tiles evenly; padded rows are sliced off at the end.
    b_pad = _round_up(B, bt)
    if b_pad != B:
        enc_s = jnp.pad(enc_s, ((0, b_pad - B), (0, 0), (0, 0)))
        att2 = jnp.pad(att2, ((0, b_pad - B), (0, 0)))
        mask_i = jnp.pad(mask_i, ((0, b_pad - B), (0, 0)))

    grid = (b_pad // bt,)

    # Chip-aware scoped-VMEM limit: never request v7x's full 64 MiB.
    est = _vmem_estimate(bt, n_pad, E, A, enc_bytes, enc_bytes)
    limit_cap = (48 << 20) if vmem_cap <= (64 << 20) else (100 << 20)
    vmem_limit = int(min(max(int(est * 1.3), 32 << 20), limit_cap))

    full = lambda shape: pl.BlockSpec(shape, lambda i: tuple(0 for _ in shape))
    kernel = functools.partial(attention_kernel, n_valid=N)

    awe_p, alpha_p = pl.pallas_call(
        kernel,
        out_shape=(
            jax.ShapeDtypeStruct((b_pad, E), jnp.float32),       # awe
            jax.ShapeDtypeStruct((b_pad, n_pad), jnp.float32),   # alpha
        ),
        grid_spec=pltpu.PrefetchScalarGridSpec(
            num_scalar_prefetch=0,
            grid=grid,
            in_specs=[
                # TODO(synk): on v5e, if profiling shows the enc DMA exposed,
                # add pipeline_mode=pl.Buffered(3) on this spec (sweep 2 vs 3).
                pl.BlockSpec((bt, n_pad, E), lambda i: (i, 0, 0)),  # encoder
                pl.BlockSpec((bt, A), lambda i: (i, 0)),            # att2 (hoisted)
                pl.BlockSpec((bt, n_pad), lambda i: (i, 0)),        # mask
                full((E, A)),                                       # We^T (resident)
                full((1, A)),                                       # wf row
                full((1, 1)),                                       # bf
            ],
            out_specs=[
                pl.BlockSpec((bt, E), lambda i: (i, 0)),            # awe
                pl.BlockSpec((bt, n_pad), lambda i: (i, 0)),        # alpha
            ],
        ),
        compiler_params=pltpu.CompilerParams(
            dimension_semantics=("parallel",),
            vmem_limit_bytes=vmem_limit,
        ),
    )(enc_s, att2, mask_i, we_t, wf_row, bf2)

    return awe_p[:B], alpha_p[:B, :N]


# ----------------------------------------------------------------------------
# Pure-JAX reference (matches the PyTorch module)
# ----------------------------------------------------------------------------
def attention_ref(encoder_out, decoder_hidden, params, mask=None):
    we, be, wd, bd, wf, bf = params
    att1 = encoder_out @ we.T + be                                   # (B, N, A)
    att2 = decoder_hidden @ wd.T + bd                                # (B, A)
    att = (jnp.tanh(att1 + att2[:, None, :]) @ wf.T + bf)[..., 0]    # (B, N)
    if mask is not None:
        att = jnp.where(mask == 0, -1.0e9, att)
    alpha = jax.nn.softmax(att, axis=1)
    awe = (encoder_out * alpha[..., None]).sum(axis=1)
    return awe, alpha


if __name__ == "__main__":
    key = jax.random.PRNGKey(0)
    k = jax.random.split(key, 12)

    # Small shared parameter set (encoder_dim=32, decoder_dim=32, attention_dim=32).
    E, D, A = 32, 32, 32
    params = (
        0.1 * jax.random.normal(k[2], (A, E), jnp.float32),   # encoder_att.weight
        0.1 * jax.random.normal(k[3], (A,), jnp.float32),     # encoder_att.bias
        0.1 * jax.random.normal(k[4], (A, D), jnp.float32),   # decoder_att.weight
        0.1 * jax.random.normal(k[5], (A,), jnp.float32),     # decoder_att.bias
        0.1 * jax.random.normal(k[6], (1, A), jnp.float32),   # full_att.weight
        0.1 * jax.random.normal(k[7], (1,), jnp.float32),     # full_att.bias
    )

    # --- Test 1: small batch, f32 MXU path (tight tolerance, full-batch block)
    B, N = 2, 16
    enc = jax.random.normal(k[0], (B, N, E), jnp.float32)
    dec = jax.random.normal(k[1], (B, D), jnp.float32)
    mask = jnp.ones((B, N), jnp.float32).at[1, N - 4:].set(0.0)

    awe, alpha = attention_pallas(enc, dec, params, mask, mxu_dtype=jnp.float32)
    jax.block_until_ready((awe, alpha))
    awe_r, alpha_r = attention_ref(enc, dec, params, mask)
    assert jnp.allclose(awe, awe_r, atol=2e-3, rtol=2e-3), "awe mismatch (f32)"
    assert jnp.allclose(alpha, alpha_r, atol=2e-3, rtol=2e-3), "alpha mismatch (f32)"

    # --- Test 2: larger batch / ragged N, default bf16 streaming + bf16 MXU
    #             (exercises N- and B-padding and grid >= 2).
    B2, N2 = 40, 20
    enc2 = jax.random.normal(k[8], (B2, N2, E), jnp.float32)
    dec2 = jax.random.normal(k[9], (B2, D), jnp.float32)
    mask2 = (jax.random.uniform(k[10], (B2, N2)) > 0.2).astype(jnp.float32)
    mask2 = mask2.at[:, 0].set(1.0)   # keep at least one valid position per row

    awe2, alpha2 = attention_pallas(enc2, dec2, params, mask2)   # bf16 default
    jax.block_until_ready((awe2, alpha2))
    awe2_r, alpha2_r = attention_ref(enc2, dec2, params, mask2)
    assert jnp.allclose(awe2, awe2_r, atol=4e-2, rtol=4e-2), "awe mismatch (bf16)"
    assert jnp.allclose(alpha2, alpha2_r, atol=4e-2, rtol=4e-2), "alpha mismatch (bf16)"

    # --- Test 3: fully-masked row edge case (must be uniform over the true N)
    mask3 = mask2.at[3, :].set(0.0)
    awe3, alpha3 = attention_pallas(enc2, dec2, params, mask3)
    jax.block_until_ready((awe3, alpha3))
    awe3_r, alpha3_r = attention_ref(enc2, dec2, params, mask3)
    assert jnp.allclose(awe3, awe3_r, atol=4e-2, rtol=4e-2), "awe mismatch (masked row)"
    assert jnp.allclose(alpha3, alpha3_r, atol=4e-2, rtol=4e-2), "alpha mismatch (masked row)"

    print("KERNEL_OK")
</pallas_src>

<mosaic_0001>
module attributes {stable_mosaic.version = 11 : i64} {
  func.func @attention_kernel(%arg0: i32, %arg1: memref<2x16x32xf32, #tpu.memory_space<vmem>>, %arg2: memref<2x32xf32, #tpu.memory_space<vmem>>, %arg3: memref<2x16xi32, #tpu.memory_space<vmem>>, %arg4: memref<32x32xf32, #tpu.memory_space<vmem>>, %arg5: memref<1x32xf32, #tpu.memory_space<vmem>>, %arg6: memref<1x1xf32, #tpu.memory_space<vmem>>, %arg7: memref<2x32xf32, #tpu.memory_space<vmem>>, %arg8: memref<2x16xf32, #tpu.memory_space<vmem>>) attributes {dimension_semantics = [#tpu.dimension_semantics<parallel>], iteration_bounds = array<i64: 1>, scalar_prefetch = 0 : i64, scratch_operands = 0 : i64, tpu.core_type = #tpu.core_type<tc>, window_params = [{transform_indices = @transform_0, window_bounds = array<i64: 2, 16, 32>}, {transform_indices = @transform_1, window_bounds = array<i64: 2, 32>}, {transform_indices = @transform_2, window_bounds = array<i64: 2, 16>}, {pipeline_mode = #tpu.pipeline_mode<synchronous>, transform_indices = @transform_3, window_bounds = array<i64: 32, 32>}, {pipeline_mode = #tpu.pipeline_mode<synchronous>, transform_indices = @transform_4, window_bounds = array<i64: 1, 32>}, {pipeline_mode = #tpu.pipeline_mode<synchronous>, transform_indices = @transform_5, window_bounds = array<i64: 1, 1>}, {transform_indices = @transform_6, window_bounds = array<i64: 2, 32>}, {transform_indices = @transform_7, window_bounds = array<i64: 2, 16>}]} {
    %c0 = arith.constant 0 : index
    %c0_0 = arith.constant 0 : index
    %c0_1 = arith.constant 0 : index
    %0 = vector.load %arg1[%c0, %c0_0, %c0_1] : memref<2x16x32xf32, #tpu.memory_space<vmem>>, vector<2x16x32xf32>
    %1 = vector.shape_cast %0 : vector<2x16x32xf32> to vector<32x32xf32>
    %c0_2 = arith.constant 0 : index
    %c0_3 = arith.constant 0 : index
    %2 = vector.load %arg4[%c0_2, %c0_3] : memref<32x32xf32, #tpu.memory_space<vmem>>, vector<32x32xf32>
    %cst = arith.constant dense<0.000000e+00> : vector<32x32xf32>
    %3 = tpu.matmul %1, %2, %cst {dimension_numbers = #tpu.dot_dimension_numbers<[1], [0], [0], [1], [0, 0, 1, 1], [], []>} : vector<32x32xf32>, vector<32x32xf32>, vector<32x32xf32> -> vector<32x32xf32>
    %4 = vector.shape_cast %3 : vector<32x32xf32> to vector<2x16x32xf32>
    %c0_4 = arith.constant 0 : index
    %c0_5 = arith.constant 0 : index
    %5 = vector.load %arg2[%c0_4, %c0_5] : memref<2x32xf32, #tpu.memory_space<vmem>>, vector<2x32xf32>
    %6 = vector.shape_cast %5 : vector<2x32xf32> to vector<2x1x32xf32>
    %7 = vector.broadcast %6 : vector<2x1x32xf32> to vector<2x16x32xf32>
    %8 = arith.addf %4, %7 : vector<2x16x32xf32>
    %9 = math.tanh %8 : vector<2x16x32xf32>
    %c0_6 = arith.constant 0 : index
    %c0_7 = arith.constant 0 : index
    %10 = vector.load %arg5[%c0_6, %c0_7] : memref<1x32xf32, #tpu.memory_space<vmem>>, vector<1x32xf32>
    %11 = vector.shape_cast %10 : vector<1x32xf32> to vector<1x1x32xf32>
    %12 = vector.broadcast %11 : vector<1x1x32xf32> to vector<2x16x32xf32>
    %13 = arith.mulf %9, %12 : vector<2x16x32xf32>
    %cst_8 = arith.constant dense<0.000000e+00> : vector<2x16xf32>
    %14 = vector.multi_reduction <add>, %13, %cst_8 [2] : vector<2x16x32xf32> to vector<2x16xf32>
    %c0_9 = arith.constant 0 : index
    %c0_10 = arith.constant 0 : index
    %15 = vector.load %arg6[%c0_9, %c0_10] : memref<1x1xf32, #tpu.memory_space<vmem>>, vector<1x1xf32>
    %16 = vector.broadcast %15 : vector<1x1xf32> to vector<2x16xf32>
    %17 = arith.addf %14, %16 : vector<2x16xf32>
    %c0_11 = arith.constant 0 : index
    %c0_12 = arith.constant 0 : index
    %18 = vector.load %arg3[%c0_11, %c0_12] : memref<2x16xi32, #tpu.memory_space<vmem>>, vector<2x16xi32>
    %c0_i32 = arith.constant 0 : i32
    %19 = vector.broadcast %c0_i32 : i32 to vector<2x16xi32>
    %20 = arith.cmpi sgt, %18, %19 : vector<2x16xi32>
    %cst_13 = arith.constant -1.000000e+09 : f32
    %21 = vector.broadcast %cst_13 : f32 to vector<2x16xf32>
    %22 = arith.select %20, %17, %21 : vector<2x16xi1>, vector<2x16xf32>
    %cst_14 = arith.constant dense<0xFF800000> : vector<2xf32>
    %23 = vector.multi_reduction <maximumf>, %22, %cst_14 [1] : vector<2x16xf32> to vector<2xf32>
    %24 = vector.shape_cast %23 : vector<2xf32> to vector<2x1xf32>
    %25 = vector.broadcast %24 : vector<2x1xf32> to vector<2x16xf32>
    %26 = arith.subf %22, %25 : vector<2x16xf32>
    %27 = math.exp %26 : vector<2x16xf32>
    %cst_15 = arith.constant dense<0.000000e+00> : vector<2xf32>
    %28 = vector.multi_reduction <add>, %27, %cst_15 [1] : vector<2x16xf32> to vector<2xf32>
    %29 = vector.shape_cast %28 : vector<2xf32> to vector<2x1xf32>
    %30 = tpu.reciprocal %29 {approx = true} : vector<2x1xf32> -> vector<2x1xf32>
    %31 = vector.broadcast %30 : vector<2x1xf32> to vector<2x16xf32>
    %32 = arith.mulf %27, %31 : vector<2x16xf32>
    %c0_16 = arith.constant 0 : index
    %c0_17 = arith.constant 0 : index
    %33 = vector.load %arg8[%c0_16, %c0_17] : memref<2x16xf32, #tpu.memory_space<vmem>>, vector<2x16xf32>
    tpu.vector_store %arg8[%c0_16, %c0_17], %32 {strides = array<i32>} : memref<2x16xf32, #tpu.memory_space<vmem>>, vector<2x16xf32>,
    %34 = vector.shape_cast %32 : vector<2x16xf32> to vector<2x1x16xf32>
    "tpu.trace_start"() <{level = 10 : i32, message = "bqn,bne->bqe"}> : () -> ()
    %cst_18 = arith.constant dense<0.000000e+00> : vector<2x1x32xf32>
    %35 = tpu.matmul %34, %0, %cst_18 {dimension_numbers = #tpu.dot_dimension_numbers<[2], [1], [1], [2], [0, 0, 0, 1, 1, 2], [0], [0]>} : vector<2x1x16xf32>, vector<2x16x32xf32>, vector<2x1x32xf32> -> vector<2x1x32xf32>
    "tpu.trace_stop"() : () -> ()
    %36 = vector.shape_cast %35 : vector<2x1x32xf32> to vector<2x32xf32>
    %c0_19 = arith.constant 0 : index
    %c0_20 = arith.constant 0 : index
    %37 = vector.load %arg7[%c0_19, %c0_20] : memref<2x32xf32, #tpu.memory_space<vmem>>, vector<2x32xf32>
    tpu.vector_store %arg7[%c0_19, %c0_20], %36 {strides = array<i32>} : memref<2x32xf32, #tpu.memory_space<vmem>>, vector<2x32xf32>,
    return
  }
  func.func @transform_0(%arg0: i32) -> (i32, i32, i32) {
    %c0_i32 = arith.constant 0 : i32
    %c0_i32_0 = arith.constant 0 : i32
    %c0_i32_1 = arith.constant 0 : i32
    return %arg0, %c0_i32, %c0_i32_0 : i32, i32, i32
  }
  func.func @transform_1(%arg0: i32) -> (i32, i32) {
    %c0_i32 = arith.constant 0 : i32
    %c0_i32_0 = arith.constant 0 : i32
    return %arg0, %c0_i32 : i32, i32
  }
  func.func @transform_2(%arg0: i32) -> (i32, i32) {
    %c0_i32 = arith.constant 0 : i32
    %c0_i32_0 = arith.constant 0 : i32
    return %arg0, %c0_i32 : i32, i32
  }
  func.func @transform_3(%arg0: i32) -> (i32, i32) {
    %c0_i32 = arith.constant 0 : i32
    %c0_i32_0 = arith.constant 0 : i32
    %c0_i32_1 = arith.constant 0 : i32
    return %c0_i32, %c0_i32_0 : i32, i32
  }
  func.func @transform_4(%arg0: i32) -> (i32, i32) {
    %c0_i32 = arith.constant 0 : i32
    %c0_i32_0 = arith.constant 0 : i32
    %c0_i32_1 = arith.constant 0 : i32
    return %c0_i32, %c0_i32_0 : i32, i32
  }
  func.func @transform_5(%arg0: i32) -> (i32, i32) {
    %c0_i32 = arith.constant 0 : i32
    %c0_i32_0 = arith.constant 0 : i32
    %c0_i32_1 = arith.constant 0 : i32
    return %c0_i32, %c0_i32_0 : i32, i32
  }
  func.func @transform_6(%arg0: i32) -> (i32, i32) {
    %c0_i32 = arith.constant 0 : i32
    %c0_i32_0 = arith.constant 0 : i32
    return %arg0, %c0_i32 : i32, i32
  }
  func.func @transform_7(%arg0: i32) -> (i32, i32) {
    %c0_i32 = arith.constant 0 : i32
    %c0_i32_0 = arith.constant 0 : i32
    return %arg0, %c0_i32 : i32, i32
  }
}

</mosaic_0001>

<bundles_post_ra>
// kernel: tpu_custom_call.1
= control target key start
LH: loop header
LB: loop body
LE: loop exit
PB: predicated region body
PF: predicated region fallthrough
CT: control target
= control target key end

     0   :  { %s766_s0 = inlined_call_operand.hbm [shape: f32[2,16,32], index: 0, kind: input, shape index: {}]   ;;  %s767_s1 = inlined_call_operand.vmem [shape: f32[2,32], index: 1, kind: input, shape index: {}]   ;;  %s768_s2 = inlined_call_operand.vmem [shape: s32[2,16], index: 2, kind: input, shape index: {}]   ;;  %s769_s3 = inlined_call_operand.hbm [shape: f32[32,32], index: 3, kind: input, shape index: {}]   ;;  %s770_s4 = inlined_call_operand.vmem [shape: f32[1,32], index: 4, kind: input, shape index: {}]   ;;  %s771_s5 = inlined_call_operand.<no memory space> [shape: f32[1,1], index: 5, kind: input, shape index: {}]   ;;  %s772_s6 = inlined_call_operand.hbm [shape: f32[2,32], index: 6, kind: output, shape index: {0}]   ;;  %s773_s7 = inlined_call_operand.hbm [shape: f32[2,16], index: 7, kind: output, shape index: {1}]  }
   0x1   :  { %v13_v0 = vstv %s771_s5 }
   0x2   :  { %14 = vst [vmem:[#allocation2] sm:$0x1] %v13_v0 }
   0x3   :  { %15 = vsyncpa [#allocation4], 0 }
   0x4   :  { %16 = vsyncpa [#allocation7], 0 }
   0x5   :  { %17 = vsyncpa [#allocation5], 0 }
   0x6   :  { %18 = vsyncpa [#allocation10], 0  ;;  %s654_s26 = smov [#allocation3]  }
   0x7   :  { %s24_s27 = sshll.u32 %s654_s26, 4  ;;  %s25_s27 = int_to_ptr.vmem [resolvable:$true] %s24_s27 }
   0x8   :  { %s574_s28 = scalar_lea.vmem %s25_s27, 512  ;;  %p579_p1 = scmp.lt.s32.totalorder %s25_s27, %s25_s27 }
   0x9   :  { %p575_p0 = scmp.ne.s32.totalorder %s25_s27, %s574_s28  ;;  %p580_p2 = scmp.lt.s32.totalorder %s574_s28, %s574_s28 }
   0xb   :  { %p581_p3 = por %p580_p2, %p579_p1 }
   0xd   :  { %p582_p4 = pnand %p581_p3, %p575_p0 }
   0xf   :  { %585 = shalt.err (!%p582_p4)
}
  0x10   :  { %s655_s29 = smov 128   ;;  %s656_s30 = smov 8  }
  0x11   :  { %30 = dma.hbm_to_vmem [thread:$0]  %s766_s0, 512, %s25_s27, [#allocation4], %s655_s29, %s655_s29, %s656_s30  }
  0x12   :  { %s657_s5 = smov [#allocation6]  }
  0x13   :  { %s40_s10 = sshll.u32 %s657_s5, 4  ;;  %s41_s10 = int_to_ptr.vmem [resolvable:$true] %s40_s10 }
  0x14   :  { %s594_s11 = scalar_lea.vmem %s41_s10, 512  ;;  %p599_p6 = scmp.lt.s32.totalorder %s41_s10, %s41_s10 }
  0x15   :  { %p595_p5 = scmp.ne.s32.totalorder %s41_s10, %s594_s11  ;;  %p600_p7 = scmp.lt.s32.totalorder %s594_s11, %s594_s11 }
  0x17   :  { %p601_p8 = por %p600_p7, %p599_p6 }
  0x19   :  { %p602_p9 = pnand %p601_p8, %p595_p5 }
  0x1b   :  { %605 = shalt.err (!%p602_p9)
}
  0x1c   :  { %46 = dma.hbm_to_vmem [thread:$0]  %s769_s3, 512, %s41_s10, [#allocation7], %s655_s29, %s655_s29, %s656_s30  }
  0x1d   :  { %646 = dma.done.wait [#allocation4], 512  }
  0x1e   :  { %647 = vsyncadd [#allocation4], 4294966784 }
  0x1f   :  { %648 = dma.done.wait [#allocation7], 512  }
  0x20   :  { %649 = vsyncadd [#allocation7], 4294966784  ;;  %vm65_vm0 = vcmask 261120   ;;  %v64_v1 = vld [vmem:[#allocation6 + $0x18] sm:$0xff]  ;;  %v63_v2 = vld [vmem:[#allocation6 + $0x10] sm:$0xff]  ;;  %v658_v9 = vmov 0   ;;  %v176_v12 = vlaneseq }
  0x21   :  { %515 = vmatprep.subr.mxu0 %v64_v1  ;;  %v713_v3 = vld [vmem:[#allocation3] sm:$0xff]  ;;  %v62_v4 = vld [vmem:[#allocation6 + $0x8] sm:$0xff]  ;;  %v719_v7 = vld [vmem:[#allocation3 + $0x10] sm:$0xff]  ;;  %553 = vset.pattern.permute.xlu0 %v658_v9  ;;  %v659_v10 = vmov 1966171168   ;;  %vm259_vm1 = vcmask 130112  }
  0x22   :  { %516 = vmatpush3.msra.mxu0 %v64_v1  ;;  %523 = vmatprep.mubr.msk.f32.mxu0 %vm65_vm0, %v713_v3  ;;  %v61_v5 = vld [vmem:[#allocation6] sm:$0xff]  ;;  %v717_v6 = vld [vmem:[#allocation3 + $0x8] sm:$0xff]  ;;  %v725_v8 = vld [vmem:[#allocation3 + $0x18] sm:$0xff]  ;;  %v174_v11 = vunpack.c.l.s4 %v659_v10  ;;  %v177_v14 = vshrl.u32 %v176_v12, 7  ;;  %v249_v46 = vand.u32 127, %v176_v12  ;;  %vm270_vm2 = vcmask 1041409  }
  0x23   :  { %517 = vmatprep.subr.mxu0 %v63_v2  ;;  %v496_v16 = vld.sshfl [vmem:[%s767_s1] sm:$0x11 pattern:$0x75316420]  ;;  %vm274_vm4 = vcmask 123904   ;;  %vm661_vm5 = vmmov 0  }
  0x24   :  { %518 = vmatpush3.msra.mxu0 %v63_v2  ;;  %v175_v13 = vunpack.c.0.s8 %v174_v11  ;;  %v189_v18 = vsub.s32 0, %v177_v14  ;;  %v172_v19 = vcombine.high %v496_v16, %v496_v16  ;;  %v497_v31 = vld [vmem:[%s770_s4] ss:$0 sm:$0xff]  ;;  %v254_v48 = vadd.s32 4294967288, %v249_v46 }
  0x25   :  { %519 = vmatprep.subr.mxu0 %v62_v4  ;;  %v498_v44 = vld [vmem:[#allocation2] ss:$0 sm:$0xff]  ;;  %v252_v50 = vsub.s32 %v249_v46, %v177_v14  ;;  %vm310_vm6 = vcmask 130048  }
  0x26   :  { %520 = vmatpush3.msra.mxu0 %v62_v4  ;;  %v729_v15 = vsub.s32 %v175_v13, %v177_v14  ;;  %v257_v51 = vsub.s32 %v254_v48, %v177_v14  ;;  %v242_v58 = vld [vmem:[%s768_s2] sm:$0x3]  ;;  %v660_v13 = vmov 0.0   ;;  %s662_s2 = smov [#allocation9]  }
  0x27   :  { %521 = vmatprep.subr.mxu0 %v61_v5  ;;  %vm243_vm3 = vcmp.gt.s32.totalorder %v242_v58, 0  ;;  %529 = vmatprep.subr.mxu1 %v660_v13  ;;  %s478_s16 = sshll.u32 %s662_s2, 4  ;;  %s479_s16 = int_to_ptr.vmem [resolvable:$true] %s478_s16 }
  0x28   :  { %522 = vmatpush3.msra.mxu0 %v61_v5  ;;  %v179_v17 = vrot.slane %v496_v16, %v729_v15  ;;  %v186_v21 = vrot.slane %v172_v19, %v729_v15  ;;  %533 = vmatprep.mubr.msk.f32.mxu1 %vm661_vm5, %v660_v13  ;;  %s606_s17 = scalar_lea.vmem %s479_s16, 32  ;;  %p611_p11 = scmp.lt.s32.totalorder %s479_s16, %s479_s16 }
  0x29   :  { %524 = vmatmul.mubr.msk.f32.vlgmr.msra.gmra.mxu0 %vm65_vm0, %v717_v6  ;;  %530 = vmatpush3.msra.mxu1 %v717_v6  ;;  %p607_p10 = scmp.ne.s32.totalorder %s479_s16, %s606_s17  ;;  %p612_p12 = scmp.lt.s32.totalorder %s606_s17, %s606_s17 }
  0x2a   :  { %526 = vmatprep.mubr.msk.f32.mxu0 %vm65_vm0, %v719_v7  ;;  %v190_v20 = vrot.slane %v179_v17, %v189_v18  ;;  %v194_v24 = vrot.slane %v186_v21, %v189_v18  ;;  %531 = vmatprep.subr.mxu1 %v660_v13 }
  0x2b   :  { %532 = vmatpush3.msra.mxu1 %v713_v3  ;;  %p613_p13 = por %p612_p12, %p611_p11 }
  0x2c   :  { %536 = vmatprep.subr.mxu1 %v660_v13 }
  0x2d   :  { %527 = vmatmul.mubr.msk.f32.gmra.mxu0 %vm65_vm0, %v725_v8  ;;  %p614_p0 = pnand %p613_p13, %p607_p10 }
  0xe9   :  { %v525_v22 = vpop.f32.mrf.mxu0 }
  0xea   :  { %v198_v23 = vadd.f32 %v525_v22, %v190_v20 }
  0xeb   :  { %v144_v25 = vpop.f32.mrf.mxu0 }
  0xec   :  { %554 = vtanh.f32 %v198_v23  ;;  %v197_v26 = vadd.f32 %v190_v20, %v144_v25 }
  0xed   :  { %v528_v27 = vpop.f32.mrf.mxu0 }
  0xee   :  { %556 = vtanh.f32 %v197_v26  ;;  %v200_v28 = vadd.f32 %v528_v27, %v194_v24 }
  0xef   :  { %v154_v29 = vpop.f32.mrf.mxu0 }
  0xf0   :  { %v199_v30 = vadd.f32 %v194_v24, %v154_v29  ;;  %558 = vtanh.f32 %v200_v28 }
  0xf2   :  { %560 = vtanh.f32 %v199_v30 }
  0xf9   :  { %v555_v32 = vpop.eup %554 }
  0xfa   :  { %v213_v33 = vmul.f32 %v555_v32, %v497_v31 }
  0xfb   :  { %v557_v34 = vpop.eup %556 }
  0xfc   :  { %v219_v35 = vsel %vm65_vm0, %v213_v33, 0.0  ;;  %v212_v36 = vmul.f32 %v557_v34, %v497_v31 }
  0xfd   :  { %220 = vadd.xlane.f32.xlu0 %v219_v35  ;;  %v559_v37 = vpop.eup %558 }
  0xfe   :  { %v216_v39 = vsel %vm65_vm0, %v212_v36, 0.0  ;;  %v215_v42 = vmul.f32 %v559_v37, %v497_v31 }
  0xff   :  { %v561_v38 = vpop.eup %560 }
 0x100   :  { %v214_v40 = vmul.f32 %v561_v38, %v497_v31  ;;  %v225_v43 = vsel %vm65_vm0, %v215_v42, 0.0 }
 0x101   :  { %217 = vadd.xlane.f32.xlu0 %v216_v39 }
 0x102   :  { %v222_v41 = vsel %vm65_vm0, %v214_v40, 0.0 }
 0x103   :  { %223 = vadd.xlane.f32.xlu1 %v222_v41 }
 0x107   :  { %226 = vadd.xlane.f32.xlu1 %v225_v43 }
 0x117   :  { %235 = vperm.xlu0 %553, %v498_v44  }
 0x186   :  { %v221_v45 = vpop.xlane.xlu0 %220 }
 0x18a   :  { %v218_v49 = vpop.xlane.xlu0 %217 }
 0x18c   :  { %v224_v47 = vpop.xlane.xlu1 %223 }
 0x190   :  { %v227_v52 = vpop.xlane.xlu1 %226 }
 0x192   :  { %v236_v53 = vpop.permute.xlu0 %235 }
 0x193   :  { %v238_v54 = vadd.f32 %v236_v53, %v218_v49  ;;  %v239_v55 = vadd.f32 %v236_v53, %v221_v45  ;;  %v240_v56 = vadd.f32 %v236_v53, %v224_v47  ;;  %v241_v57 = vadd.f32 %v236_v53, %v227_v52 }
 0x195   :  { %v253_v59 = vrot.slane %v238_v54, %v252_v50  ;;  %v258_v60 = vrot.slane %v239_v55, %v257_v51  ;;  %v264_v61 = vrot.slane %v240_v56, %v252_v50  ;;  %v268_v62 = vrot.slane %v241_v57, %v257_v51 }
 0x197   :  { %v260_v63 = vsel %vm259_vm1, %v258_v60, %v253_v59  ;;  %v269_v0 = vsel %vm259_vm1, %v268_v62, %v264_v61 }
 0x198   :  { %v271_v1 = vsel %vm270_vm2, %v269_v0, %v260_v63 }
 0x199   :  { %v273_v2 = vsel %vm243_vm3, %v271_v1, -1e+09 }
 0x19a   :  { %v275_v4 = vsel %vm274_vm4, %v273_v2, -inf }
 0x19b   :  { %276 = vmax.xlane.f32.xlu1 %v275_v4 }
 0x224   :  { %v277_v5 = vpop.xlane.xlu1 %276 }
 0x225   :  { %v278_v9 = vsub.f32 %v273_v2, %v277_v5 }
 0x227   :  { %v279_v10 = vmul.f32 1.442695, %v278_v9 }
 0x229   :  { %562 = vpow2.f32 %v279_v10 }
 0x236   :  { %v563_v11 = vpop.eup %562 }
 0x237   :  { %v281_v12 = vsel %vm274_vm4, %v563_v11, 0.0 }
 0x238   :  { %282 = vadd.xlane.f32.xlu1 %v281_v12 }
 0x2c1   :  { %v283_v14 = vpop.xlane.xlu1 %282 }
 0x2c2   :  { %564 = vrcp.f32 %v283_v14 }
 0x2cf   :  { %v565_v16 = vpop.eup %564 }
 0x2d0   :  { %v285_v17 = vmul.f32 %v565_v16, %v563_v11 }
 0x2d2   :  { %v294_v18 = vrot.slane %v285_v17, %v729_v15  ;;  %286 = vst.msk [vmem:[#allocation9] sm:$0x3] %vm274_vm4, %v285_v17 }
 0x2d4   :  { %v295_v19 = vcombine.high %v294_v18, %v294_v18  ;;  %v302_v20 = vrot.slane %v294_v18, %v729_v15 }
 0x2d6   :  { %534 = vmatmul.mubr.msk.f32.vlgmr.msra.gmra.mxu1 %vm310_vm6, %v302_v20  ;;  %v309_v3 = vrot.slane %v295_v19, %v729_v15 }
 0x2d7   :  { %537 = vmatpush3.msra.mxu1 %v725_v8  ;;  %540 = vmatprep.mubr.msk.f32.mxu1 %vm661_vm5, %v660_v13 }
 0x2d8   :  { %538 = vmatprep.subr.mxu1 %v660_v13 }
 0x2d9   :  { %539 = vmatpush3.msra.mxu1 %v719_v7 }
 0x2da   :  { %541 = vmatmul.mubr.msk.f32.vlgmr.msra.gmra.mxu1 %vm310_vm6, %v309_v3 }
 0x2db   :  { %617 = shalt.err (!%p614_p0)
}
 0x2dc   :  { %481 = dma.vmem_to_hbm [thread:$0]  %s479_s16, 32, %s773_s7, [#allocation10]   ;;  %vm460_vm7 = vcmask 254976  }
 0x2dd   :  { %s663_s20 = smov [#allocation8]  }
 0x2de   :  { %s468_s21 = sshll.u32 %s663_s20, 4  ;;  %s469_s21 = int_to_ptr.vmem [resolvable:$true] %s468_s21 }
 0x2df   :  { %s626_s22 = scalar_lea.vmem %s469_s21, 32  ;;  %p631_p2 = scmp.lt.s32.totalorder %s469_s21, %s469_s21 }
 0x2e0   :  { %p627_p1 = scmp.ne.s32.totalorder %s469_s21, %s626_s22  ;;  %p632_p3 = scmp.lt.s32.totalorder %s626_s22, %s626_s22 }
 0x2e2   :  { %p633_p4 = por %p632_p3, %p631_p2 }
 0x2e4   :  { %p634_p5 = pnand %p633_p4, %p627_p1 }
 0x396   :  { %v379_v6 = vpop.f32.mrf.mxu1 }
 0x398   :  { %v535_v8 = vpop.f32.mrf.mxu1 }
 0x39a   :  { %v451_v7 = vpop.f32.mrf.mxu1 }
 0x39b   :  { %v457_v15 = vrot.slane %v451_v7, 7 }
 0x39c   :  { %v542_v21 = vpop.f32.mrf.mxu1 }
 0x39d   :  { %v458_v22 = vsel %vm270_vm2, %v457_v15, %v379_v6 }
 0x39e   :  { %461 = vst.msk [vmem:[#allocation8] sm:$0x3] %vm460_vm7, %v458_v22 }
 0x39f   :  { %637 = shalt.err (!%p634_p5)
}
 0x3a0   :  { %471 = dma.vmem_to_hbm [thread:$0]  %s469_s21, 32, %s772_s6, [#allocation5]  }
 0x3a1   :  { %650 = dma.done.wait [#allocation5], 32  }
 0x3a2   :  { %651 = vsyncadd [#allocation5], 4294967264 }
 0x3a3   :  { %652 = dma.done.wait [#allocation10], 32  }
 0x3a4   :  { %653 = vsyncadd [#allocation10], 4294967264 }
 0x3a5   :  { %488 = vsyncpa [#allocation4], 1 }
 0x3a6   :  { %489 = vsyncpa [#allocation7], 1 }
 0x3a7   :  { %490 = vsyncpa [#allocation5], 1 }
 0x3a8   :  { %491 = vsyncpa [#allocation10], 1 }

</bundles_post_ra>
